<compile_context>
chip_gen: v6e
topology: v6e:2x2x1
jax: 0.10.0
libtpu: 0.0.40
codegen_flags: <defaults>
</compile_context>

<pallas_src>
import functools

import jax
import jax.numpy as jnp
import numpy as np
from jax.experimental import pallas as pl
from jax.experimental.pallas import tpu as pltpu


def _attn_kernel(x_ref, wq_ref, wk_ref, wv_ref, bq_ref, bk_ref, bv_ref,
                 wo_ref, bo_ref, g_ref, *refs,
                 scaling, tau, H, Dh, output_attentions, mxu_dtype):
    if output_attentions:
        (out_ref, w_ref, l_ref,
         qh_ref, kh_ref, vh_ref, ctxh_ref, ctxf_ref) = refs
    else:
        out_ref, qh_ref, kh_ref, vh_ref, ctxh_ref, ctxf_ref = refs
        w_ref = l_ref = None

    h = pl.program_id(1)
    # Contract activation E (axis 1) with in_features (axis 1) of the
    # (out_features, in_features) Linear weights:  y = x @ W.T
    dn = (((1,), (1,)), ((), ()))

    # ---- Phase 1 (h == 0): full-width QKV projections for this batch --------
    @pl.when(h == 0)
    def _():
        x = x_ref[...].astype(mxu_dtype)                         # (T, E)
        q = (jax.lax.dot_general(x, wq_ref[...], dn,
                                 preferred_element_type=jnp.float32)
             + bq_ref[...]) * scaling
        k = (jax.lax.dot_general(x, wk_ref[...], dn,
                                 preferred_element_type=jnp.float32)
             + bk_ref[...])
        v = (jax.lax.dot_general(x, wv_ref[...], dn,
                                 preferred_element_type=jnp.float32)
             + bv_ref[...])
        for hh in range(H):                      # static de-interleave by head
            sl = slice(hh * Dh, (hh + 1) * Dh)
            qh_ref[hh] = q[:, sl].astype(qh_ref.dtype)
            kh_ref[hh] = k[:, sl].astype(kh_ref.dtype)
            vh_ref[hh] = v[:, sl].astype(vh_ref.dtype)

    # ---- Per-head attention core (dynamic leading-dim index into scratch) ---
    q_h = qh_ref[h]                              # (T, Dh)
    k_h = kh_ref[h]
    v_h = vh_ref[h]

    logits = jax.lax.dot_general(q_h, k_h, dn,
                                 preferred_element_type=jnp.float32)  # (T, T)

    # Gumbel-softmax (tau, hard=False): softmax((logits + g) / tau), f32 math.
    # TODO(synk): optionally generate the noise in-kernel with pltpu.prng_seed /
    # pltpu.prng_random_bits to drop the (B,H,T,T) HBM read when bit-exact
    # reproducibility against an external jax.random sample is not required.
    z = (logits + g_ref[...]) * (1.0 / tau)
    z = z - jnp.max(z, axis=-1, keepdims=True)
    e = jnp.exp(z)
    probs = e * pl.reciprocal(jnp.sum(e, axis=-1, keepdims=True), approx=True)

    if output_attentions:
        l_ref[...] = logits
        w_ref[...] = probs

    ctx = jnp.dot(probs.astype(mxu_dtype), v_h,
                  preferred_element_type=jnp.float32)                 # (T, Dh)
    ctxh_ref[h] = ctx.astype(ctxh_ref.dtype)

    # ---- Phase 3 (h == H-1): single full-K output projection ----------------
    @pl.when(h == H - 1)
    def _():
        for hh in range(H):                      # static re-interleave of heads
            ctxf_ref[:, hh * Dh:(hh + 1) * Dh] = ctxh_ref[hh]
        out = (jax.lax.dot_general(ctxf_ref[...], wo_ref[...], dn,
                                   preferred_element_type=jnp.float32)
               + bo_ref[...])
        out_ref[...] = out.astype(out_ref.dtype)


def simple_attention_pallas(x, params, gumbel, *, num_heads, tau=0.8,
                            output_attentions=True, mxu_dtype=jnp.float32):
    B, T, E = x.shape
    H = num_heads
    Dh = E // H
    assert Dh * H == E, "embed_dim must be divisible by num_heads"
    scaling = Dh ** -0.5

    wq, bq, wk, bk, wv, bv, wo, bo = params
    # Weights are resident in VMEM (constant block index) and pre-cast to the
    # MXU input dtype (bf16 recommended on v6e/v7x); biases stay f32.
    wq = wq.astype(mxu_dtype)
    wk = wk.astype(mxu_dtype)
    wv = wv.astype(mxu_dtype)
    wo = wo.astype(mxu_dtype)
    bq2 = bq.reshape(1, E).astype(jnp.float32)
    bk2 = bk.reshape(1, E).astype(jnp.float32)
    bv2 = bv.reshape(1, E).astype(jnp.float32)
    bo2 = bo.reshape(1, E).astype(jnp.float32)

    kernel = functools.partial(
        _attn_kernel, scaling=scaling, tau=tau, H=H, Dh=Dh,
        output_attentions=output_attentions, mxu_dtype=mxu_dtype)

    grid = (B, H)

    wmat_spec = pl.BlockSpec((E, E), lambda b, h: (0, 0))     # resident weights
    bias_spec = pl.BlockSpec((1, E), lambda b, h: (0, 0))     # resident biases
    x_spec = pl.BlockSpec((None, T, E), lambda b, h: (b, 0, 0))
    g_spec = pl.BlockSpec((None, None, T, T), lambda b, h: (b, h, 0, 0))
    out_spec = pl.BlockSpec((None, T, E), lambda b, h: (b, 0, 0))
    map_spec = pl.BlockSpec((None, None, T, T), lambda b, h: (b, h, 0, 0))

    out_specs = [out_spec]
    out_shape = [jax.ShapeDtypeStruct((B, T, E), x.dtype)]
    if output_attentions:
        out_specs += [map_spec, map_spec]
        out_shape += [jax.ShapeDtypeStruct((B, H, T, T), jnp.float32),
                      jax.ShapeDtypeStruct((B, H, T, T), jnp.float32)]

    scratch_shapes = [
        pltpu.VMEM((H, T, Dh), mxu_dtype),   # q heads (persist across h axis)
        pltpu.VMEM((H, T, Dh), mxu_dtype),   # k heads
        pltpu.VMEM((H, T, Dh), mxu_dtype),   # v heads
        pltpu.VMEM((H, T, Dh), mxu_dtype),   # per-head context
        pltpu.VMEM((T, E), mxu_dtype),       # re-interleaved context
    ]

    results = pl.pallas_call(
        kernel,
        grid=grid,
        in_specs=[x_spec, wmat_spec, wmat_spec, wmat_spec,
                  bias_spec, bias_spec, bias_spec,
                  wmat_spec, bias_spec, g_spec],
        out_specs=out_specs,
        out_shape=out_shape,
        scratch_shapes=scratch_shapes,
        compiler_params=pltpu.CompilerParams(
            dimension_semantics=("parallel", "arbitrary")),
        # TODO(synk): set vmem_limit_bytes explicitly once production T/E are
        # known (defaults: 16 MiB v5e / 32 MiB v6e,v7x scoped VMEM).
    )(x, wq, wk, wv, bq2, bk2, bv2, wo, bo2, gumbel)

    if output_attentions:
        attn_out, attn_w, attn_l = results
        return attn_out, attn_w, attn_l
    return results[0], None, None


def simple_attention_ref(x, params, gumbel, *, num_heads, tau=0.8):
    """Pure-JAX reference mirroring the PyTorch forward (same gumbel noise)."""
    B, T, E = x.shape
    H = num_heads
    Dh = E // H
    wq, bq, wk, bk, wv, bv, wo, bo = params
    q = (x @ wq.T + bq) * (Dh ** -0.5)
    k = x @ wk.T + bk
    v = x @ wv.T + bv
    qh = q.reshape(B, T, H, Dh).transpose(0, 2, 1, 3)
    kh = k.reshape(B, T, H, Dh).transpose(0, 2, 1, 3)
    vh = v.reshape(B, T, H, Dh).transpose(0, 2, 1, 3)
    logits = jnp.einsum('bhtd,bhsd->bhts', qh, kh)
    probs = jax.nn.softmax((logits + gumbel) / tau, axis=-1)
    ctx = jnp.einsum('bhts,bhsd->bhtd', probs, vh)
    ctx = ctx.transpose(0, 2, 1, 3).reshape(B, T, E)
    out = ctx @ wo.T + bo
    return out, probs, logits


if __name__ == "__main__":
    B, T, E, H = 2, 8, 32, 4
    key = jax.random.PRNGKey(0)
    keys = jax.random.split(key, 10)

    x = jax.random.normal(keys[0], (B, T, E), dtype=jnp.float32)
    s = 1.0 / np.sqrt(E)
    params = (
        jax.random.uniform(keys[1], (E, E), jnp.float32, -s, s),  # Wq
        jax.random.uniform(keys[2], (E,),   jnp.float32, -s, s),  # bq
        jax.random.uniform(keys[3], (E, E), jnp.float32, -s, s),  # Wk
        jax.random.uniform(keys[4], (E,),   jnp.float32, -s, s),  # bk
        jax.random.uniform(keys[5], (E, E), jnp.float32, -s, s),  # Wv
        jax.random.uniform(keys[6], (E,),   jnp.float32, -s, s),  # bv
        jax.random.uniform(keys[7], (E, E), jnp.float32, -s, s),  # Wo
        jax.random.uniform(keys[8], (E,),   jnp.float32, -s, s),  # bo
    )
    gumbel = jax.random.gumbel(keys[9], (B, H, T, T), dtype=jnp.float32)

    # Full path (output_attentions=True -> attn_weights / attn_logits written).
    attn_out, attn_w, attn_logits = simple_attention_pallas(
        x, params, gumbel, num_heads=H, tau=0.8, output_attentions=True)
    jax.block_until_ready((attn_out, attn_w, attn_logits))

    # Fast path: skip the two (B,H,T,T) attention-map writebacks.
    fast_out, _, _ = simple_attention_pallas(
        x, params, gumbel, num_heads=H, tau=0.8, output_attentions=False)
    jax.block_until_ready(fast_out)

    ref_out, ref_w, ref_logits = simple_attention_ref(
        x, params, gumbel, num_heads=H, tau=0.8)

    np.testing.assert_allclose(np.asarray(attn_logits), np.asarray(ref_logits),
                               rtol=1e-4, atol=1e-4)
    # approx=True reciprocal (EUP vrcp, ~2^-12 rel. err) -> slightly looser tol.
    np.testing.assert_allclose(np.asarray(attn_w), np.asarray(ref_w),
                               rtol=2e-3, atol=2e-3)
    np.testing.assert_allclose(np.asarray(attn_out), np.asarray(ref_out),
                               rtol=2e-3, atol=2e-3)
    np.testing.assert_allclose(np.asarray(fast_out), np.asarray(ref_out),
                               rtol=2e-3, atol=2e-3)
    print("KERNEL_OK")
</pallas_src>

<mosaic_0001>
module attributes {stable_mosaic.version = 11 : i64} {
  func.func @_attn_kernel(%arg0: i32, %arg1: i32, %arg2: memref<1x8x32xf32, #tpu.memory_space<vmem>>, %arg3: memref<32x32xf32, #tpu.memory_space<vmem>>, %arg4: memref<32x32xf32, #tpu.memory_space<vmem>>, %arg5: memref<32x32xf32, #tpu.memory_space<vmem>>, %arg6: memref<1x32xf32, #tpu.memory_space<vmem>>, %arg7: memref<1x32xf32, #tpu.memory_space<vmem>>, %arg8: memref<1x32xf32, #tpu.memory_space<vmem>>, %arg9: memref<32x32xf32, #tpu.memory_space<vmem>>, %arg10: memref<1x32xf32, #tpu.memory_space<vmem>>, %arg11: memref<1x1x8x8xf32, #tpu.memory_space<vmem>>, %arg12: memref<1x8x32xf32, #tpu.memory_space<vmem>>, %arg13: memref<1x1x8x8xf32, #tpu.memory_space<vmem>>, %arg14: memref<1x1x8x8xf32, #tpu.memory_space<vmem>>, %arg15: memref<4x8x8xf32, #tpu.memory_space<vmem>>, %arg16: memref<4x8x8xf32, #tpu.memory_space<vmem>>, %arg17: memref<4x8x8xf32, #tpu.memory_space<vmem>>, %arg18: memref<4x8x8xf32, #tpu.memory_space<vmem>>, %arg19: memref<8x32xf32, #tpu.memory_space<vmem>>) attributes {dimension_semantics = [#tpu.dimension_semantics<parallel>, #tpu.dimension_semantics<arbitrary>], iteration_bounds = array<i64: 2, 4>, scalar_prefetch = 0 : i64, scratch_operands = 5 : i64, tpu.core_type = #tpu.core_type<tc>, window_params = [{transform_indices = @transform_0, window_bounds = array<i64: 1, 8, 32>}, {pipeline_mode = #tpu.pipeline_mode<synchronous>, transform_indices = @transform_1, window_bounds = array<i64: 32, 32>}, {pipeline_mode = #tpu.pipeline_mode<synchronous>, transform_indices = @transform_2, window_bounds = array<i64: 32, 32>}, {pipeline_mode = #tpu.pipeline_mode<synchronous>, transform_indices = @transform_3, window_bounds = array<i64: 32, 32>}, {pipeline_mode = #tpu.pipeline_mode<synchronous>, transform_indices = @transform_4, window_bounds = array<i64: 1, 32>}, {pipeline_mode = #tpu.pipeline_mode<synchronous>, transform_indices = @transform_5, window_bounds = array<i64: 1, 32>}, {pipeline_mode = #tpu.pipeline_mode<synchronous>, transform_indices = @transform_6, window_bounds = array<i64: 1, 32>}, {pipeline_mode = #tpu.pipeline_mode<synchronous>, transform_indices = @transform_7, window_bounds = array<i64: 32, 32>}, {pipeline_mode = #tpu.pipeline_mode<synchronous>, transform_indices = @transform_8, window_bounds = array<i64: 1, 32>}, {transform_indices = @transform_9, window_bounds = array<i64: 1, 1, 8, 8>}, {transform_indices = @transform_10, window_bounds = array<i64: 1, 8, 32>}, {transform_indices = @transform_11, window_bounds = array<i64: 1, 1, 8, 8>}, {transform_indices = @transform_12, window_bounds = array<i64: 1, 1, 8, 8>}]} {
    %c0_i32 = arith.constant 0 : i32
    %0 = arith.cmpi eq, %arg1, %c0_i32 : i32
    %1 = arith.extui %0 : i1 to i32
    %c0_i32_0 = arith.constant 0 : i32
    %2 = arith.cmpi ne, %1, %c0_i32_0 : i32
    scf.if %2 {
      %c0_25 = arith.constant 0 : index
      %c0_26 = arith.constant 0 : index
      %c0_27 = arith.constant 0 : index
      %42 = vector.load %arg2[%c0_25, %c0_26, %c0_27] : memref<1x8x32xf32, #tpu.memory_space<vmem>>, vector<1x8x32xf32>
      %43 = vector.shape_cast %42 : vector<1x8x32xf32> to vector<8x32xf32>
      %c0_28 = arith.constant 0 : index
      %c0_29 = arith.constant 0 : index
      %44 = vector.load %arg3[%c0_28, %c0_29] : memref<32x32xf32, #tpu.memory_space<vmem>>, vector<32x32xf32>
      %cst_30 = arith.constant dense<0.000000e+00> : vector<8x32xf32>
      %45 = tpu.matmul %43, %44, %cst_30 {dimension_numbers = #tpu.dot_dimension_numbers<[1], [1], [0], [0], [0, 0, 1, 0], [], []>} : vector<8x32xf32>, vector<32x32xf32>, vector<8x32xf32> -> vector<8x32xf32>
      %c0_31 = arith.constant 0 : index
      %c0_32 = arith.constant 0 : index
      %46 = vector.load %arg6[%c0_31, %c0_32] : memref<1x32xf32, #tpu.memory_space<vmem>>, vector<1x32xf32>
      %47 = vector.broadcast %46 : vector<1x32xf32> to vector<8x32xf32>
      %48 = arith.addf %45, %47 : vector<8x32xf32>
      %cst_33 = arith.constant 0.353553385 : f32
      %49 = vector.broadcast %cst_33 : f32 to vector<8x32xf32>
      %50 = arith.mulf %48, %49 : vector<8x32xf32>
      %c0_34 = arith.constant 0 : index
      %c0_35 = arith.constant 0 : index
      %51 = vector.load %arg4[%c0_34, %c0_35] : memref<32x32xf32, #tpu.memory_space<vmem>>, vector<32x32xf32>
      %cst_36 = arith.constant dense<0.000000e+00> : vector<8x32xf32>
      %52 = tpu.matmul %43, %51, %cst_36 {dimension_numbers = #tpu.dot_dimension_numbers<[1], [1], [0], [0], [0, 0, 1, 0], [], []>} : vector<8x32xf32>, vector<32x32xf32>, vector<8x32xf32> -> vector<8x32xf32>
      %c0_37 = arith.constant 0 : index
      %c0_38 = arith.constant 0 : index
      %53 = vector.load %arg7[%c0_37, %c0_38] : memref<1x32xf32, #tpu.memory_space<vmem>>, vector<1x32xf32>
      %54 = vector.broadcast %53 : vector<1x32xf32> to vector<8x32xf32>
      %55 = arith.addf %52, %54 : vector<8x32xf32>
      %c0_39 = arith.constant 0 : index
      %c0_40 = arith.constant 0 : index
      %56 = vector.load %arg5[%c0_39, %c0_40] : memref<32x32xf32, #tpu.memory_space<vmem>>, vector<32x32xf32>
      %cst_41 = arith.constant dense<0.000000e+00> : vector<8x32xf32>
      %57 = tpu.matmul %43, %56, %cst_41 {dimension_numbers = #tpu.dot_dimension_numbers<[1], [1], [0], [0], [0, 0, 1, 0], [], []>} : vector<8x32xf32>, vector<32x32xf32>, vector<8x32xf32> -> vector<8x32xf32>
      %c0_42 = arith.constant 0 : index
      %c0_43 = arith.constant 0 : index
      %58 = vector.load %arg8[%c0_42, %c0_43] : memref<1x32xf32, #tpu.memory_space<vmem>>, vector<1x32xf32>
      %59 = vector.broadcast %58 : vector<1x32xf32> to vector<8x32xf32>
      %60 = arith.addf %57, %59 : vector<8x32xf32>
      %61 = vector.extract_strided_slice %50 {offsets = [0, 0], sizes = [8, 8], strides = [1, 1]} : vector<8x32xf32> to vector<8x8xf32>
      %c0_44 = arith.constant 0 : index
      %c0_45 = arith.constant 0 : index
      %c0_46 = arith.constant 0 : index
      %62 = vector.load %arg15[%c0_44, %c0_45, %c0_46] : memref<4x8x8xf32, #tpu.memory_space<vmem>>, vector<1x8x8xf32>
      %63 = vector.shape_cast %62 : vector<1x8x8xf32> to vector<8x8xf32>
      %64 = vector.shape_cast %61 : vector<8x8xf32> to vector<1x8x8xf32>
      tpu.vector_store %arg15[%c0_44, %c0_45, %c0_46], %64 {strides = array<i32>} : memref<4x8x8xf32, #tpu.memory_space<vmem>>, vector<1x8x8xf32>,
      %65 = vector.extract_strided_slice %55 {offsets = [0, 0], sizes = [8, 8], strides = [1, 1]} : vector<8x32xf32> to vector<8x8xf32>
      %c0_47 = arith.constant 0 : index
      %c0_48 = arith.constant 0 : index
      %c0_49 = arith.constant 0 : index
      %66 = vector.load %arg16[%c0_47, %c0_48, %c0_49] : memref<4x8x8xf32, #tpu.memory_space<vmem>>, vector<1x8x8xf32>
      %67 = vector.shape_cast %66 : vector<1x8x8xf32> to vector<8x8xf32>
      %68 = vector.shape_cast %65 : vector<8x8xf32> to vector<1x8x8xf32>
      tpu.vector_store %arg16[%c0_47, %c0_48, %c0_49], %68 {strides = array<i32>} : memref<4x8x8xf32, #tpu.memory_space<vmem>>, vector<1x8x8xf32>,
      %69 = vector.extract_strided_slice %60 {offsets = [0, 0], sizes = [8, 8], strides = [1, 1]} : vector<8x32xf32> to vector<8x8xf32>
      %c0_50 = arith.constant 0 : index
      %c0_51 = arith.constant 0 : index
      %c0_52 = arith.constant 0 : index
      %70 = vector.load %arg17[%c0_50, %c0_51, %c0_52] : memref<4x8x8xf32, #tpu.memory_space<vmem>>, vector<1x8x8xf32>
      %71 = vector.shape_cast %70 : vector<1x8x8xf32> to vector<8x8xf32>
      %72 = vector.shape_cast %69 : vector<8x8xf32> to vector<1x8x8xf32>
      tpu.vector_store %arg17[%c0_50, %c0_51, %c0_52], %72 {strides = array<i32>} : memref<4x8x8xf32, #tpu.memory_space<vmem>>, vector<1x8x8xf32>,
      %73 = vector.extract_strided_slice %50 {offsets = [0, 8], sizes = [8, 8], strides = [1, 1]} : vector<8x32xf32> to vector<8x8xf32>
      %c1 = arith.constant 1 : index
      %c0_53 = arith.constant 0 : index
      %c0_54 = arith.constant 0 : index
      %74 = vector.load %arg15[%c1, %c0_53, %c0_54] : memref<4x8x8xf32, #tpu.memory_space<vmem>>, vector<1x8x8xf32>
      %75 = vector.shape_cast %74 : vector<1x8x8xf32> to vector<8x8xf32>
      %76 = vector.shape_cast %73 : vector<8x8xf32> to vector<1x8x8xf32>
      tpu.vector_store %arg15[%c1, %c0_53, %c0_54], %76 {strides = array<i32>} : memref<4x8x8xf32, #tpu.memory_space<vmem>>, vector<1x8x8xf32>,
      %77 = vector.extract_strided_slice %55 {offsets = [0, 8], sizes = [8, 8], strides = [1, 1]} : vector<8x32xf32> to vector<8x8xf32>
      %c1_55 = arith.constant 1 : index
      %c0_56 = arith.constant 0 : index
      %c0_57 = arith.constant 0 : index
      %78 = vector.load %arg16[%c1_55, %c0_56, %c0_57] : memref<4x8x8xf32, #tpu.memory_space<vmem>>, vector<1x8x8xf32>
      %79 = vector.shape_cast %78 : vector<1x8x8xf32> to vector<8x8xf32>
      %80 = vector.shape_cast %77 : vector<8x8xf32> to vector<1x8x8xf32>
      tpu.vector_store %arg16[%c1_55, %c0_56, %c0_57], %80 {strides = array<i32>} : memref<4x8x8xf32, #tpu.memory_space<vmem>>, vector<1x8x8xf32>,
      %81 = vector.extract_strided_slice %60 {offsets = [0, 8], sizes = [8, 8], strides = [1, 1]} : vector<8x32xf32> to vector<8x8xf32>
      %c1_58 = arith.constant 1 : index
      %c0_59 = arith.constant 0 : index
      %c0_60 = arith.constant 0 : index
      %82 = vector.load %arg17[%c1_58, %c0_59, %c0_60] : memref<4x8x8xf32, #tpu.memory_space<vmem>>, vector<1x8x8xf32>
      %83 = vector.shape_cast %82 : vector<1x8x8xf32> to vector<8x8xf32>
      %84 = vector.shape_cast %81 : vector<8x8xf32> to vector<1x8x8xf32>
      tpu.vector_store %arg17[%c1_58, %c0_59, %c0_60], %84 {strides = array<i32>} : memref<4x8x8xf32, #tpu.memory_space<vmem>>, vector<1x8x8xf32>,
      %85 = vector.extract_strided_slice %50 {offsets = [0, 16], sizes = [8, 8], strides = [1, 1]} : vector<8x32xf32> to vector<8x8xf32>
      %c2 = arith.constant 2 : index
      %c0_61 = arith.constant 0 : index
      %c0_62 = arith.constant 0 : index
      %86 = vector.load %arg15[%c2, %c0_61, %c0_62] : memref<4x8x8xf32, #tpu.memory_space<vmem>>, vector<1x8x8xf32>
      %87 = vector.shape_cast %86 : vector<1x8x8xf32> to vector<8x8xf32>
      %88 = vector.shape_cast %85 : vector<8x8xf32> to vector<1x8x8xf32>
      tpu.vector_store %arg15[%c2, %c0_61, %c0_62], %88 {strides = array<i32>} : memref<4x8x8xf32, #tpu.memory_space<vmem>>, vector<1x8x8xf32>,
      %89 = vector.extract_strided_slice %55 {offsets = [0, 16], sizes = [8, 8], strides = [1, 1]} : vector<8x32xf32> to vector<8x8xf32>
      %c2_63 = arith.constant 2 : index
      %c0_64 = arith.constant 0 : index
      %c0_65 = arith.constant 0 : index
      %90 = vector.load %arg16[%c2_63, %c0_64, %c0_65] : memref<4x8x8xf32, #tpu.memory_space<vmem>>, vector<1x8x8xf32>
      %91 = vector.shape_cast %90 : vector<1x8x8xf32> to vector<8x8xf32>
      %92 = vector.shape_cast %89 : vector<8x8xf32> to vector<1x8x8xf32>
      tpu.vector_store %arg16[%c2_63, %c0_64, %c0_65], %92 {strides = array<i32>} : memref<4x8x8xf32, #tpu.memory_space<vmem>>, vector<1x8x8xf32>,
      %93 = vector.extract_strided_slice %60 {offsets = [0, 16], sizes = [8, 8], strides = [1, 1]} : vector<8x32xf32> to vector<8x8xf32>
      %c2_66 = arith.constant 2 : index
      %c0_67 = arith.constant 0 : index
      %c0_68 = arith.constant 0 : index
      %94 = vector.load %arg17[%c2_66, %c0_67, %c0_68] : memref<4x8x8xf32, #tpu.memory_space<vmem>>, vector<1x8x8xf32>
      %95 = vector.shape_cast %94 : vector<1x8x8xf32> to vector<8x8xf32>
      %96 = vector.shape_cast %93 : vector<8x8xf32> to vector<1x8x8xf32>
      tpu.vector_store %arg17[%c2_66, %c0_67, %c0_68], %96 {strides = array<i32>} : memref<4x8x8xf32, #tpu.memory_space<vmem>>, vector<1x8x8xf32>,
      %97 = vector.extract_strided_slice %50 {offsets = [0, 24], sizes = [8, 8], strides = [1, 1]} : vector<8x32xf32> to vector<8x8xf32>
      %c3 = arith.constant 3 : index
      %c0_69 = arith.constant 0 : index
      %c0_70 = arith.constant 0 : index
      %98 = vector.load %arg15[%c3, %c0_69, %c0_70] : memref<4x8x8xf32, #tpu.memory_space<vmem>>, vector<1x8x8xf32>
      %99 = vector.shape_cast %98 : vector<1x8x8xf32> to vector<8x8xf32>
      %100 = vector.shape_cast %97 : vector<8x8xf32> to vector<1x8x8xf32>
      tpu.vector_store %arg15[%c3, %c0_69, %c0_70], %100 {strides = array<i32>} : memref<4x8x8xf32, #tpu.memory_space<vmem>>, vector<1x8x8xf32>,
      %101 = vector.extract_strided_slice %55 {offsets = [0, 24], sizes = [8, 8], strides = [1, 1]} : vector<8x32xf32> to vector<8x8xf32>
      %c3_71 = arith.constant 3 : index
      %c0_72 = arith.constant 0 : index
      %c0_73 = arith.constant 0 : index
      %102 = vector.load %arg16[%c3_71, %c0_72, %c0_73] : memref<4x8x8xf32, #tpu.memory_space<vmem>>, vector<1x8x8xf32>
      %103 = vector.shape_cast %102 : vector<1x8x8xf32> to vector<8x8xf32>
      %104 = vector.shape_cast %101 : vector<8x8xf32> to vector<1x8x8xf32>
      tpu.vector_store %arg16[%c3_71, %c0_72, %c0_73], %104 {strides = array<i32>} : memref<4x8x8xf32, #tpu.memory_space<vmem>>, vector<1x8x8xf32>,
      %105 = vector.extract_strided_slice %60 {offsets = [0, 24], sizes = [8, 8], strides = [1, 1]} : vector<8x32xf32> to vector<8x8xf32>
      %c3_74 = arith.constant 3 : index
      %c0_75 = arith.constant 0 : index
      %c0_76 = arith.constant 0 : index
      %106 = vector.load %arg17[%c3_74, %c0_75, %c0_76] : memref<4x8x8xf32, #tpu.memory_space<vmem>>, vector<1x8x8xf32>
      %107 = vector.shape_cast %106 : vector<1x8x8xf32> to vector<8x8xf32>
      %108 = vector.shape_cast %105 : vector<8x8xf32> to vector<1x8x8xf32>
      tpu.vector_store %arg17[%c3_74, %c0_75, %c0_76], %108 {strides = array<i32>} : memref<4x8x8xf32, #tpu.memory_space<vmem>>, vector<1x8x8xf32>,
    } else {
    }
    %3 = arith.index_cast %arg1 : i32 to index
    %c0 = arith.constant 0 : index
    %c0_1 = arith.constant 0 : index
    %4 = vector.load %arg15[%3, %c0, %c0_1] : memref<4x8x8xf32, #tpu.memory_space<vmem>>, vector<1x8x8xf32>
    %5 = vector.shape_cast %4 : vector<1x8x8xf32> to vector<8x8xf32>
    %6 = arith.index_cast %arg1 : i32 to index
    %c0_2 = arith.constant 0 : index
    %c0_3 = arith.constant 0 : index
    %7 = vector.load %arg16[%6, %c0_2, %c0_3] : memref<4x8x8xf32, #tpu.memory_space<vmem>>, vector<1x8x8xf32>
    %8 = vector.shape_cast %7 : vector<1x8x8xf32> to vector<8x8xf32>
    %9 = arith.index_cast %arg1 : i32 to index
    %c0_4 = arith.constant 0 : index
    %c0_5 = arith.constant 0 : index
    %10 = vector.load %arg17[%9, %c0_4, %c0_5] : memref<4x8x8xf32, #tpu.memory_space<vmem>>, vector<1x8x8xf32>
    %11 = vector.shape_cast %10 : vector<1x8x8xf32> to vector<8x8xf32>
    %cst = arith.constant dense<0.000000e+00> : vector<8x8xf32>
    %12 = tpu.matmul %5, %8, %cst {dimension_numbers = #tpu.dot_dimension_numbers<[1], [1], [0], [0], [0, 0, 1, 0], [], []>} : vector<8x8xf32>, vector<8x8xf32>, vector<8x8xf32> -> vector<8x8xf32>
    %c0_6 = arith.constant 0 : index
    %c0_7 = arith.constant 0 : index
    %c0_8 = arith.constant 0 : index
    %c0_9 = arith.constant 0 : index
    %13 = vector.load %arg11[%c0_6, %c0_7, %c0_8, %c0_9] : memref<1x1x8x8xf32, #tpu.memory_space<vmem>>, vector<1x1x8x8xf32>
    %14 = vector.shape_cast %13 : vector<1x1x8x8xf32> to vector<8x8xf32>
    %15 = arith.addf %12, %14 : vector<8x8xf32>
    %cst_10 = arith.constant 1.250000e+00 : f32
    %16 = vector.broadcast %cst_10 : f32 to vector<8x8xf32>
    %17 = arith.mulf %15, %16 : vector<8x8xf32>
    %cst_11 = arith.constant dense<0xFF800000> : vector<8xf32>
    %18 = vector.multi_reduction <maximumf>, %17, %cst_11 [1] : vector<8x8xf32> to vector<8xf32>
    %19 = vector.shape_cast %18 : vector<8xf32> to vector<8x1xf32>
    %20 = vector.broadcast %19 : vector<8x1xf32> to vector<8x8xf32>
    %21 = arith.subf %17, %20 : vector<8x8xf32>
    %22 = math.exp %21 : vector<8x8xf32>
    %cst_12 = arith.constant dense<0.000000e+00> : vector<8xf32>
    %23 = vector.multi_reduction <add>, %22, %cst_12 [1] : vector<8x8xf32> to vector<8xf32>
    %24 = vector.shape_cast %23 : vector<8xf32> to vector<8x1xf32>
    %25 = tpu.reciprocal %24 {approx = true} : vector<8x1xf32> -> vector<8x1xf32>
    %26 = vector.broadcast %25 : vector<8x1xf32> to vector<8x8xf32>
    %27 = arith.mulf %22, %26 : vector<8x8xf32>
    %c0_13 = arith.constant 0 : index
    %c0_14 = arith.constant 0 : index
    %c0_15 = arith.constant 0 : index
    %c0_16 = arith.constant 0 : index
    %28 = vector.load %arg14[%c0_13, %c0_14, %c0_15, %c0_16] : memref<1x1x8x8xf32, #tpu.memory_space<vmem>>, vector<1x1x8x8xf32>
    %29 = vector.shape_cast %28 : vector<1x1x8x8xf32> to vector<8x8xf32>
    %30 = vector.shape_cast %12 : vector<8x8xf32> to vector<1x1x8x8xf32>
    tpu.vector_store %arg14[%c0_13, %c0_14, %c0_15, %c0_16], %30 {strides = array<i32>} : memref<1x1x8x8xf32, #tpu.memory_space<vmem>>, vector<1x1x8x8xf32>,
    %c0_17 = arith.constant 0 : index
    %c0_18 = arith.constant 0 : index
    %c0_19 = arith.constant 0 : index
    %c0_20 = arith.constant 0 : index
    %31 = vector.load %arg13[%c0_17, %c0_18, %c0_19, %c0_20] : memref<1x1x8x8xf32, #tpu.memory_space<vmem>>, vector<1x1x8x8xf32>
    %32 = vector.shape_cast %31 : vector<1x1x8x8xf32> to vector<8x8xf32>
    %33 = vector.shape_cast %27 : vector<8x8xf32> to vector<1x1x8x8xf32>
    tpu.vector_store %arg13[%c0_17, %c0_18, %c0_19, %c0_20], %33 {strides = array<i32>} : memref<1x1x8x8xf32, #tpu.memory_space<vmem>>, vector<1x1x8x8xf32>,
    %cst_21 = arith.constant dense<0.000000e+00> : vector<8x8xf32>
    %34 = tpu.matmul %27, %11, %cst_21 {dimension_numbers = #tpu.dot_dimension_numbers<[1], [0], [0], [1], [0, 0, 1, 1], [], []>} : vector<8x8xf32>, vector<8x8xf32>, vector<8x8xf32> -> vector<8x8xf32>
    %35 = arith.index_cast %arg1 : i32 to index
    %c0_22 = arith.constant 0 : index
    %c0_23 = arith.constant 0 : index
    %36 = vector.load %arg18[%35, %c0_22, %c0_23] : memref<4x8x8xf32, #tpu.memory_space<vmem>>, vector<1x8x8xf32>
    %37 = vector.shape_cast %36 : vector<1x8x8xf32> to vector<8x8xf32>
    %38 = vector.shape_cast %34 : vector<8x8xf32> to vector<1x8x8xf32>
    tpu.vector_store %arg18[%35, %c0_22, %c0_23], %38 {strides = array<i32>} : memref<4x8x8xf32, #tpu.memory_space<vmem>>, vector<1x8x8xf32>,
    %c3_i32 = arith.constant 3 : i32
    %39 = arith.cmpi eq, %arg1, %c3_i32 : i32
    %40 = arith.extui %39 : i1 to i32
    %c0_i32_24 = arith.constant 0 : i32
    %41 = arith.cmpi ne, %40, %c0_i32_24 : i32
    scf.if %41 {
      %c0_25 = arith.constant 0 : index
      %c0_26 = arith.constant 0 : index
      %c0_27 = arith.constant 0 : index
      %42 = vector.load %arg18[%c0_25, %c0_26, %c0_27] : memref<4x8x8xf32, #tpu.memory_space<vmem>>, vector<1x8x8xf32>
      %43 = vector.shape_cast %42 : vector<1x8x8xf32> to vector<8x8xf32>
      %c0_28 = arith.constant 0 : index
      %c0_29 = arith.constant 0 : index
      %44 = vector.load %arg19[%c0_28, %c0_29] : memref<8x32xf32, #tpu.memory_space<vmem>>, vector<8x8xf32>
      tpu.vector_store %arg19[%c0_28, %c0_29], %43 {strides = array<i32>} : memref<8x32xf32, #tpu.memory_space<vmem>>, vector<8x8xf32>,
      %c1 = arith.constant 1 : index
      %c0_30 = arith.constant 0 : index
      %c0_31 = arith.constant 0 : index
      %45 = vector.load %arg18[%c1, %c0_30, %c0_31] : memref<4x8x8xf32, #tpu.memory_space<vmem>>, vector<1x8x8xf32>
      %46 = vector.shape_cast %45 : vector<1x8x8xf32> to vector<8x8xf32>
      %c0_32 = arith.constant 0 : index
      %c8 = arith.constant 8 : index
      %47 = vector.load %arg19[%c0_32, %c8] : memref<8x32xf32, #tpu.memory_space<vmem>>, vector<8x8xf32>
      tpu.vector_store %arg19[%c0_32, %c8], %46 {strides = array<i32>} : memref<8x32xf32, #tpu.memory_space<vmem>>, vector<8x8xf32>,
      %c2 = arith.constant 2 : index
      %c0_33 = arith.constant 0 : index
      %c0_34 = arith.constant 0 : index
      %48 = vector.load %arg18[%c2, %c0_33, %c0_34] : memref<4x8x8xf32, #tpu.memory_space<vmem>>, vector<1x8x8xf32>
      %49 = vector.shape_cast %48 : vector<1x8x8xf32> to vector<8x8xf32>
      %c0_35 = arith.constant 0 : index
      %c16 = arith.constant 16 : index
      %50 = vector.load %arg19[%c0_35, %c16] : memref<8x32xf32, #tpu.memory_space<vmem>>, vector<8x8xf32>
      tpu.vector_store %arg19[%c0_35, %c16], %49 {strides = array<i32>} : memref<8x32xf32, #tpu.memory_space<vmem>>, vector<8x8xf32>,
      %c3 = arith.constant 3 : index
      %c0_36 = arith.constant 0 : index
      %c0_37 = arith.constant 0 : index
      %51 = vector.load %arg18[%c3, %c0_36, %c0_37] : memref<4x8x8xf32, #tpu.memory_space<vmem>>, vector<1x8x8xf32>
      %52 = vector.shape_cast %51 : vector<1x8x8xf32> to vector<8x8xf32>
      %c0_38 = arith.constant 0 : index
      %c24 = arith.constant 24 : index
      %53 = vector.load %arg19[%c0_38, %c24] : memref<8x32xf32, #tpu.memory_space<vmem>>, vector<8x8xf32>
      tpu.vector_store %arg19[%c0_38, %c24], %52 {strides = array<i32>} : memref<8x32xf32, #tpu.memory_space<vmem>>, vector<8x8xf32>,
      %c0_39 = arith.constant 0 : index
      %c0_40 = arith.constant 0 : index
      %54 = vector.load %arg19[%c0_39, %c0_40] : memref<8x32xf32, #tpu.memory_space<vmem>>, vector<8x32xf32>
      %c0_41 = arith.constant 0 : index
      %c0_42 = arith.constant 0 : index
      %55 = vector.load %arg9[%c0_41, %c0_42] : memref<32x32xf32, #tpu.memory_space<vmem>>, vector<32x32xf32>
      %cst_43 = arith.constant dense<0.000000e+00> : vector<8x32xf32>
      %56 = tpu.matmul %54, %55, %cst_43 {dimension_numbers = #tpu.dot_dimension_numbers<[1], [1], [0], [0], [0, 0, 1, 0], [], []>} : vector<8x32xf32>, vector<32x32xf32>, vector<8x32xf32> -> vector<8x32xf32>
      %c0_44 = arith.constant 0 : index
      %c0_45 = arith.constant 0 : index
      %57 = vector.load %arg10[%c0_44, %c0_45] : memref<1x32xf32, #tpu.memory_space<vmem>>, vector<1x32xf32>
      %58 = vector.broadcast %57 : vector<1x32xf32> to vector<8x32xf32>
      %59 = arith.addf %56, %58 : vector<8x32xf32>
      %c0_46 = arith.constant 0 : index
      %c0_47 = arith.constant 0 : index
      %c0_48 = arith.constant 0 : index
      %60 = vector.load %arg12[%c0_46, %c0_47, %c0_48] : memref<1x8x32xf32, #tpu.memory_space<vmem>>, vector<1x8x32xf32>
      %61 = vector.shape_cast %60 : vector<1x8x32xf32> to vector<8x32xf32>
      %62 = vector.shape_cast %59 : vector<8x32xf32> to vector<1x8x32xf32>
      tpu.vector_store %arg12[%c0_46, %c0_47, %c0_48], %62 {strides = array<i32>} : memref<1x8x32xf32, #tpu.memory_space<vmem>>, vector<1x8x32xf32>,
    } else {
    }
    return
  }
  func.func @transform_0(%arg0: i32, %arg1: i32) -> (i32, i32, i32) {
    %c0_i32 = arith.constant 0 : i32
    %c0_i32_0 = arith.constant 0 : i32
    %c0_i32_1 = arith.constant 0 : i32
    return %arg0, %c0_i32, %c0_i32_0 : i32, i32, i32
  }
  func.func @transform_1(%arg0: i32, %arg1: i32) -> (i32, i32) {
    %c0_i32 = arith.constant 0 : i32
    %c0_i32_0 = arith.constant 0 : i32
    %c0_i32_1 = arith.constant 0 : i32
    return %c0_i32, %c0_i32_0 : i32, i32
  }
  func.func @transform_2(%arg0: i32, %arg1: i32) -> (i32, i32) {
    %c0_i32 = arith.constant 0 : i32
    %c0_i32_0 = arith.constant 0 : i32
    %c0_i32_1 = arith.constant 0 : i32
    return %c0_i32, %c0_i32_0 : i32, i32
  }
  func.func @transform_3(%arg0: i32, %arg1: i32) -> (i32, i32) {
    %c0_i32 = arith.constant 0 : i32
    %c0_i32_0 = arith.constant 0 : i32
    %c0_i32_1 = arith.constant 0 : i32
    return %c0_i32, %c0_i32_0 : i32, i32
  }
  func.func @transform_4(%arg0: i32, %arg1: i32) -> (i32, i32) {
    %c0_i32 = arith.constant 0 : i32
    %c0_i32_0 = arith.constant 0 : i32
    %c0_i32_1 = arith.constant 0 : i32
    return %c0_i32, %c0_i32_0 : i32, i32
  }
  func.func @transform_5(%arg0: i32, %arg1: i32) -> (i32, i32) {
    %c0_i32 = arith.constant 0 : i32
    %c0_i32_0 = arith.constant 0 : i32
    %c0_i32_1 = arith.constant 0 : i32
    return %c0_i32, %c0_i32_0 : i32, i32
  }
  func.func @transform_6(%arg0: i32, %arg1: i32) -> (i32, i32) {
    %c0_i32 = arith.constant 0 : i32
    %c0_i32_0 = arith.constant 0 : i32
    %c0_i32_1 = arith.constant 0 : i32
    return %c0_i32, %c0_i32_0 : i32, i32
  }
  func.func @transform_7(%arg0: i32, %arg1: i32) -> (i32, i32) {
    %c0_i32 = arith.constant 0 : i32
    %c0_i32_0 = arith.constant 0 : i32
    %c0_i32_1 = arith.constant 0 : i32
    return %c0_i32, %c0_i32_0 : i32, i32
  }
  func.func @transform_8(%arg0: i32, %arg1: i32) -> (i32, i32) {
    %c0_i32 = arith.constant 0 : i32
    %c0_i32_0 = arith.constant 0 : i32
    %c0_i32_1 = arith.constant 0 : i32
    return %c0_i32, %c0_i32_0 : i32, i32
  }
  func.func @transform_9(%arg0: i32, %arg1: i32) -> (i32, i32, i32, i32) {
    %c0_i32 = arith.constant 0 : i32
    %c0_i32_0 = arith.constant 0 : i32
    %c0_i32_1 = arith.constant 0 : i32
    return %arg0, %arg1, %c0_i32, %c0_i32_0 : i32, i32, i32, i32
  }
  func.func @transform_10(%arg0: i32, %arg1: i32) -> (i32, i32, i32) {
    %c0_i32 = arith.constant 0 : i32
    %c0_i32_0 = arith.constant 0 : i32
    %c0_i32_1 = arith.constant 0 : i32
    return %arg0, %c0_i32, %c0_i32_0 : i32, i32, i32
  }
  func.func @transform_11(%arg0: i32, %arg1: i32) -> (i32, i32, i32, i32) {
    %c0_i32 = arith.constant 0 : i32
    %c0_i32_0 = arith.constant 0 : i32
    %c0_i32_1 = arith.constant 0 : i32
    return %arg0, %arg1, %c0_i32, %c0_i32_0 : i32, i32, i32, i32
  }
  func.func @transform_12(%arg0: i32, %arg1: i32) -> (i32, i32, i32, i32) {
    %c0_i32 = arith.constant 0 : i32
    %c0_i32_0 = arith.constant 0 : i32
    %c0_i32_1 = arith.constant 0 : i32
    return %arg0, %arg1, %c0_i32, %c0_i32_0 : i32, i32, i32, i32
  }
}

</mosaic_0001>

<bundles_post_ra>
// kernel: tpu_custom_call.1
= control target key start
LH: loop header
LB: loop body
LE: loop exit
PB: predicated region body
PF: predicated region fallthrough
CT: control target
= control target key end

     0   :  { %s2692_s0 = inlined_call_operand.hbm [shape: f32[2,8,32], index: 0, kind: input, shape index: {}]   ;;  %s2693_s1 = inlined_call_operand.hbm [shape: f32[32,32], index: 1, kind: input, shape index: {}]   ;;  %s2694_s2 = inlined_call_operand.hbm [shape: f32[32,32], index: 2, kind: input, shape index: {}]   ;;  %s2695_s3 = inlined_call_operand.hbm [shape: f32[32,32], index: 3, kind: input, shape index: {}]   ;;  %s2696_s4 = inlined_call_operand.vmem [shape: f32[1,32], index: 4, kind: input, shape index: {}]   ;;  %s2697_s5 = inlined_call_operand.vmem [shape: f32[1,32], index: 5, kind: input, shape index: {}]   ;;  %s2698_s6 = inlined_call_operand.vmem [shape: f32[1,32], index: 6, kind: input, shape index: {}]   ;;  %s2699_s7 = inlined_call_operand.hbm [shape: f32[32,32], index: 7, kind: input, shape index: {}]   ;;  %s2700_s8 = inlined_call_operand.vmem [shape: f32[1,32], index: 8, kind: input, shape index: {}]   ;;  %s2701_s9 = inlined_call_operand.hbm [shape: f32[2,4,8,8], index: 9, kind: input, shape index: {}]   ;;  %s2702_s10 = inlined_call_operand.hbm [shape: f32[2,8,32], index: 10, kind: output, shape index: {0}]   ;;  %s2703_s11 = inlined_call_operand.hbm [shape: f32[2,4,8,8], index: 11, kind: output, shape index: {1}]   ;;  %s2704_s12 = inlined_call_operand.hbm [shape: f32[2,4,8,8], index: 12, kind: output, shape index: {2}]  }
   0x1   :  { %2729 = sst [smem:[#allocation38_spill]] %s2692_s0 }
   0x2   :  { %2730 = sst [smem:[#allocation39_spill]] %s2693_s1 }
   0x3   :  { %2731 = sst [smem:[#allocation40_spill]] %s2694_s2 }
   0x4   :  { %2732 = sst [smem:[#allocation41_spill]] %s2695_s3 }
   0x5   :  { %2733 = sst [smem:[#allocation42_spill]] %s2696_s4 }
   0x6   :  { %2734 = sst [smem:[#allocation43_spill]] %s2697_s5 }
   0x7   :  { %2735 = sst [smem:[#allocation44_spill]] %s2698_s6 }
   0x8   :  { %2736 = sst [smem:[#allocation45_spill]] %s2699_s7 }
   0x9   :  { %2737 = sst [smem:[#allocation46_spill]] %s2700_s8 }
   0xa   :  { %2738 = sst [smem:[#allocation47_spill]] %s2701_s9 }
   0xb   :  { %2739 = sst [smem:[#allocation48_spill]] %s2702_s10 }
   0xc   :  { %2740 = sst [smem:[#allocation49_spill]] %s2703_s11 }
   0xd   :  { %2741 = sst [smem:[#allocation50_spill]] %s2704_s12 }
   0xe   :  { %18 = vsyncpa [#allocation8], 0 }
   0xf   :  { %20 = vsyncpa [#allocation8 + $0x1], 0 }
  0x10   :  { %21 = vsyncpa [#allocation11], 0 }
  0x11   :  { %22 = vsyncpa [#allocation14], 0 }
  0x12   :  { %23 = vsyncpa [#allocation17], 0 }
  0x13   :  { %25 = vsyncpa [#allocation17 + $0x1], 0 }
  0x14   :  { %26 = vsyncpa [#allocation9], 0 }
  0x15   :  { %28 = vsyncpa [#allocation9 + $0x1], 0 }
  0x16   :  { %29 = vsyncpa [#allocation20], 0 }
  0x17   :  { %31 = vsyncpa [#allocation20 + $0x1], 0  ;;  %s2233_s21 = smov 0   ;;  %s2235_s22 = smov 0  }
  0x18   :  { %s2237_s23 = smov 0   ;;  %s2239_s24 = smov 0  }
  0x19   :  { %s2241_s25 = smov 0   ;;  %s2243_s26 = smov 0  }
  0x1a   :  { %s2245_s27 = smov 0   ;;  %s2247_s28 = smov 0  }
  0x1b   :  { %s2249_s29 = smov 0   ;;  %s2251_s30 = smov 0  }
  0x1c   :  { %s2253_s13 = smov 0  }
  0x1d LB: > { %2742 = sst [smem:[#allocation28_spill]] %s2115_s24  ;;  %s2289_s14 = sadd.s32 4294967295, %s2143_s13   ;;  %s2143_s13 = sphi %s2253_s13, %s37_s13   ;;  %s2139_s30 = sphi %s2251_s30, %s2802_s30   ;;  %s2135_s29 = sphi %s2249_s29, %s2810_s29   ;;  %s2131_s28 = sphi %s2247_s28, %s2800_s28   ;;  %s2127_s27 = sphi %s2245_s27, %s2809_s27   ;;  %s2123_s26 = sphi %s2243_s26, %s2808_s26   ;;  %s2119_s25 = sphi %s2241_s25, %s2807_s25   ;;  %s2115_s24 = sphi %s2239_s24, %s2806_s24   ;;  %s2111_s23 = sphi %s2237_s23, %s2805_s23   ;;  %s2107_s22 = sphi %s2235_s22, %s2804_s22   ;;  %s2103_s21 = sphi %s2233_s21, %s2803_s21  }
  0x1e   : > { %2743 = sst [smem:[#allocation29_spill]] %s2127_s27  ;;  %p1480_p0 = scmp.ge.s32.totalorder %s2143_s13, 1 }
  0x1f   : > { %2744 = sst [smem:[#allocation30_spill]] %s2131_s28  ;;  %p2714_p1 = scmp.eq.s32.totalorder %s2289_s14, 0 }
  0x20   : > { %2745 = sst [smem:[#allocation31_spill]] %s2139_s30  ;;  %p358_p2 = scmp.lt.s32.totalorder %s2143_s13, 9 }
  0x21   : > { %s2145_s16 = smov [#allocation10]   ;;  %s2146_s19 = smov [#allocation13]  }
  0x22   : > { %p2294_p3 = pnand %p1480_p0, %p358_p2  ;;  %s370_s17 = sshll.u32 %s2145_s16, 4  ;;  %s371_s17 = int_to_ptr.vmem [resolvable:$true] %s370_s17 }
  0x23   : > { %s396_s20 = sshll.u32 %s2146_s19, 4  ;;  %s2147_s12 = smov [#allocation12]   ;;  %s397_s20 = int_to_ptr.vmem [resolvable:$true] %s396_s20 }
  0x24   : > { %p1645_p4 = pneg %p2294_p3  ;;  %s383_s10 = sshll.u32 %s2147_s12, 4  ;;  %s384_s10 = int_to_ptr.vmem [resolvable:$true] %s383_s10 }
  0x25   : > { %s1806_s11 = scalar_lea.vmem %s371_s17, 512  ;;  %p1814_p10 = scmp.lt.s32.totalorder %s371_s17, %s371_s17 }
  0x26   : > { %p2302_p5 = pnand %p1645_p4, %p2714_p1  ;;  %p1807_p7 = scmp.ne.s32.totalorder %s371_s17, %s1806_s11 }
  0x27   : > { %p1815_p11 = scmp.lt.s32.totalorder %s1806_s11, %s1806_s11 }
  0x28   : > { %p1797_p6 = pneg %p2302_p5 }
  0x29   : > { %p1816_p12 = por %p1815_p11, %p1814_p10 }
  0x2a   : > { %p1809_p8 = pnand %p1807_p7, %p1797_p6 }
  0x2c   : > { %p1810_p9 = pneg %p1809_p8 }
  0x2e   : > { %p1817_p13 = pnand %p1816_p12, %p1810_p9 }
  0x30   : > { %1820 = shalt.err (!%p1817_p13)
}
  0x31   : > { %s2148_s16 = smov 128   ;;  %s2149_s19 = smov 8  }
  0x32   : > { %s2748_s1 = sld [smem:[#allocation39_spill]]  ;;  %s1832_s8 = scalar_lea.vmem %s397_s20, 512 }
  0x33   : > { %p1833_p0 = scmp.ne.s32.totalorder %s397_s20, %s1832_s8  ;;  %p1840_p7 = scmp.lt.s32.totalorder %s397_s20, %s397_s20 }
  0x34   : > { %p1841_p8 = scmp.lt.s32.totalorder %s1832_s8, %s1832_s8 }
  0x35   : > { %p1835_p2 = pnand %p1833_p0, %p1797_p6 }
  0x36   : > { %p1842_p9 = por %p1841_p8, %p1840_p7 }
  0x37   : > { %p1836_p4 = pneg %p1835_p2 }
  0x38   : > { %1648 = dma.hbm_to_vmem [thread:$0]  (!%p2302_p5), %s2748_s1, 512, %s371_s17, [#allocation11], %s2148_s16, %s2148_s16, %s2149_s19  }
  0x39   : > { %p1843_p10 = pnand %p1842_p9, %p1836_p4 }
  0x3b   : > { %1846 = shalt.err (!%p1843_p10)
}
  0x3c   : > { %s2749_s3 = sld [smem:[#allocation41_spill]]  ;;  %s1858_s28 = scalar_lea.vmem %s384_s10, 512 }
  0x3d   : > { %p1859_p11 = scmp.ne.s32.totalorder %s384_s10, %s1858_s28  ;;  %p1866_p0 = scmp.lt.s32.totalorder %s384_s10, %s384_s10 }
  0x3e   : > { %p1867_p2 = scmp.lt.s32.totalorder %s1858_s28, %s1858_s28 }
  0x3f   : > { %p1861_p12 = pnand %p1859_p11, %p1797_p6 }
  0x40   : > { %p1868_p4 = por %p1867_p2, %p1866_p0 }
  0x41   : > { %p1862_p13 = pneg %p1861_p12 }
  0x42   : > { %1654 = dma.hbm_to_vmem [thread:$0]  (!%p2302_p5), %s2749_s3, 512, %s397_s20, [#allocation14], %s2148_s16, %s2148_s16, %s2149_s19  }
  0x43   : > { %p1869_p7 = pnand %p1868_p4, %p1862_p13 }
  0x45   : > { %1872 = shalt.err (!%p1869_p7)
}
  0x46   : > { %s2750_s2 = sld [smem:[#allocation40_spill]]  ;;  %s2150_s17 = smov [#allocation15]  }
  0x47   : > { %s418_s20 = sshll.u32 %s2150_s17, 4  ;;  %s419_s20 = int_to_ptr.vmem [resolvable:$true] %s418_s20 }
  0x48   : > { %s1884_s12 = scalar_lea.vmem %s419_s20, 512  ;;  %p1892_p11 = scmp.lt.s32.totalorder %s419_s20, %s419_s20 }
  0x49   : > { %p1885_p8 = scmp.ne.s32.totalorder %s419_s20, %s1884_s12  ;;  %p1893_p12 = scmp.lt.s32.totalorder %s1884_s12, %s1884_s12 }
  0x4b   : > { %p1887_p9 = pnand %p1885_p8, %p1797_p6  ;;  %p1894_p13 = por %p1893_p12, %p1892_p11 }
  0x4c   : > { %1651 = dma.hbm_to_vmem [thread:$0]  (!%p2302_p5), %s2750_s2, 512, %s384_s10, [#allocation11], %s2148_s16, %s2148_s16, %s2149_s19  }
  0x4d   : > { %p1888_p10 = pneg %p1887_p9 }
  0x4f   : > { %p1895_p0 = pnand %p1894_p13, %p1888_p10 }
  0x51   : > { %1898 = shalt.err (!%p1895_p0)
}
  0x52   : > { %s2751_s7 = sld [smem:[#allocation45_spill]]  ;;  %s2709_s18 = sadd.s32 4294967294, %s2143_s13  }
  0x53   : > { %p63_p6 = scmp.ne.s32.totalorder %s2123_s26, %s2119_s25  ;;  %p2710_p2 = scmp.eq.s32.totalorder %s2143_s13, 0 }
  0x54   : > { %p69_p4 = scmp.ne.s32.totalorder %s2119_s25, %s2115_s24  ;;  %p2713_p7 = scmp.eq.s32.totalorder %s2289_s14, 7 }
  0x55   : > { %p65_p8 = por %p2710_p2, %p63_p6  ;;  %p2363_p9 = scmp.eq.s32.totalorder %s2709_s18, 7 }
  0x56   : > { %p2369_p10 = por %p2714_p1, %p69_p4  ;;  %p2715_p12 = scmp.lt.s32.totalorder %s2143_s13, 8 }
  0x57   : > { %p2381_p11 = por %p2363_p9, %p69_p4  ;;  %s435_s8 = sand.u32 1, %s2123_s26  }
  0x58   : > { %1657 = dma.hbm_to_vmem [thread:$0]  (!%p2302_p5), %s2751_s7, 512, %s419_s20, [#allocation14], %s2148_s16, %s2148_s16, %s2149_s19  }
  0x59   : > { %p2375_p5 = por %p2713_p7, %p63_p6  ;;  %s1487_s17 = sshll.u32 %s2139_s30, 7 }
  0x5a   : > { %s2756_s19 = scalar_select %p2381_p11, 1, 0 }
  0x5b   : > { %s2754_s16 = scalar_select %p2375_p5, 1, 0 }
  0x5c   : > { %2757 = sst [smem:[#allocation33_spill]] %s2756_s19  ;;  %s1486_s20 = sshll.u32 %s435_s8, 3 }
  0x5d   : > { %2755 = sst [smem:[#allocation32_spill]] %s2754_s16  ;;  %s439_s18 = scalar_lea.vmem [#allocation7], %s1486_s20 }
  0x5e   : > { %s2758_s0 = sld [smem:[#allocation38_spill]]  ;;  %s446_s1 = sshll.u32 %s439_s18, 4  ;;  %s447_s1 = int_to_ptr.vmem [resolvable:$true] %s446_s1 }
  0x5f   : > { %p2393_p13 = pnand %p2715_p12, %p65_p8  ;;  %s436_s3 = scalar_lea.sflag [#allocation8], %s435_s8 }
  0x60   : > { %s1912_s7 = scalar_lea.vmem %s447_s1, 128  ;;  %s2151_s19 = smov [#allocation7]  }
  0x61   : > { %p1901_p0 = pneg %p2393_p13  ;;  %p1913_p6 = scmp.ne.s32.totalorder %s447_s1, %s1912_s7 }
  0x62   : > { %s1917_s24 = sshll.u32 %s2151_s19, 4  ;;  %s1918_s24 = int_to_ptr.vmem [resolvable:$false] %s1917_s24 }
  0x63   : > { %p1915_p4 = pnand %p1913_p6, %p1901_p0  ;;  %p1920_p7 = scmp.lt.s32.totalorder %s447_s1, %s1918_s24 }
  0x64   : > { %s444_s11 = scalar_lea.hbm %s2758_s0, %s1487_s17  ;;  %s1919_s17 = scalar_lea.vmem %s1918_s24, 256 }
  0x65   : > { %p1916_p2 = pneg %p1915_p4  ;;  %p1921_p1 = scmp.lt.s32.totalorder %s1919_s17, %s1912_s7 }
  0x67   : > { %p1922_p11 = por %p1921_p1, %p1920_p7 }
  0x69   : > { %p1923_p8 = pnand %p1922_p11, %p1916_p2 }
  0x6b   : > { %1926 = shalt.err (!%p1923_p8)
}
  0x6c   : > { %1661 = dma.hbm_to_vmem [thread:$0]  (!%p2393_p13), %s444_s11, 128, %s447_s1, %s436_s3  }
  0x6d   : > { %s56_s7 = sadd.s32 1, %s2123_s26  ;;  %s46_s24 = sadd.s32 1, %s2135_s29 }
  0x6e   : > { %p47_p1 = scmp.ge.s32.totalorder %s46_s24, 4  ;;  %s49_s2 = sadd.s32 1, %s2139_s30 }
  0x6f   : > { %s252_s18 = sadd.s32 1, %s2111_s23  ;;  %p265_p2 = scmp.ne.s32.totalorder %s2107_s22, %s2103_s21 }
  0x70   : > { %s2812_s24 = smov (%p47_p1, %s46_s24), 0  ;;  %s2814_s2 = smov (!%p47_p1, %s49_s2), %s2139_s30 }
  0x71   : > { %2760 = sst [smem:[#allocation34_spill]] %s2812_s24  ;;  %s248_s19 = ssub.s32 %s2135_s29, %s2812_s24 }
  0x72   : > { %p259_p7 = scmp.ne.s32.totalorder %s2111_s23, %s2107_s22  ;;  %p51_p11 = scmp.ge.s32.totalorder %s2814_s2, 2 }
  0x73   : > { %p2761_p13 = scmp.eq.s32.totalorder %s2289_s14, 0  ;;  %p2763_p6 = scmp.eq.s32.totalorder %s2289_s14, 7 }
  0x74   : > { %p2428_p8 = por %p2363_p9, %p265_p2  ;;  %s2816_s2 = smov (%p51_p11, %s2814_s2), 0 }
  0x75   : > { %p2416_p0 = por %p265_p2, %p2761_p13  ;;  %p2422_p4 = por %p2763_p6, %p259_p7 }
  0x76   : > { %s2766_s21 = scalar_select %p2428_p8, 1, 0 }
  0x77   : > { %s2764_s3 = scalar_select %p2422_p4, 1, 0 }
  0x78   : > { %2767 = sst [smem:[#allocation36_spill]] %s2766_s21  ;;  %p2769_p1 = scmp.eq.s32.totalorder %s2143_s13, 0 }
  0x79   : > { %2765 = sst [smem:[#allocation35_spill]] %s2764_s3  ;;  %s453_s20 = sand.u32 1, %s2111_s23  }
  0x7a   : > { %2768 = sst [smem:[#allocation37_spill]] %s2816_s2  ;;  %p2436_p12 = por %p259_p7, %p2769_p1 }
  0x7b   : > { %s53_s12 = ssub.s32 %s2139_s30, %s2816_s2  ;;  %s1489_s10 = sshll.u32 %s2139_s30, 2 }
  0x7c   : > { %p54_p13 = scmp.eq.s32.totalorder %s53_s12, 0  ;;  %s249_s11 = sor.u32 %s248_s19, %s53_s12 }
  0x7d   : > { %p250_p6 = scmp.eq.s32.totalorder %s249_s11, 0  ;;  %s1488_s28 = sshll.u32 %s453_s20, 3 }
  0x7e   : > { %s2445_s17 = scalar_select %p54_p13, %s2123_s26, %s56_s7  }
  0x7f   : > { %s2448_s0 = scalar_select %p250_p6, %s2111_s23, %s252_s18  }
  0x80   : > { %s462_s24 = sadd.s32 %s2135_s29, %s1489_s10  ;;  %s457_s16 = scalar_lea.vmem [#allocation16], %s1488_s28 }
  0x81   : > { %s1490_s21 = sshll.u32 %s462_s24, 7  ;;  %s466_s3 = sshll.u32 %s457_s16, 4  ;;  %s467_s3 = int_to_ptr.vmem [resolvable:$true] %s466_s3 }
  0x82   : > { %s2771_s9 = sld [smem:[#allocation47_spill]]  ;;  %p2772_p9 = scmp.lt.s32.totalorder %s2143_s13, 8 }
  0x83   : > { %s454_s7 = scalar_lea.sflag [#allocation17], %s453_s20  ;;  %s1940_s18 = scalar_lea.vmem %s467_s3, 128 }
  0x84   : > { %p2458_p2 = pnand %p2772_p9, %p2436_p12  ;;  %p1941_p11 = scmp.ne.s32.totalorder %s467_s3, %s1940_s18 }
  0x85   : > { %s2152_s16 = smov [#allocation16]  }
  0x86   : > { %p1929_p7 = pneg %p2458_p2  ;;  %s1945_s24 = sshll.u32 %s2152_s16, 4  ;;  %s1946_s24 = int_to_ptr.vmem [resolvable:$false] %s1945_s24 }
  0x87   : > { %s1947_s4 = scalar_lea.vmem %s1946_s24, 256  ;;  %p1948_p6 = scmp.lt.s32.totalorder %s467_s3, %s1946_s24 }
  0x88   : > { %s464_s27 = scalar_lea.hbm %s2771_s9, %s1490_s21  ;;  %p1943_p1 = pnand %p1941_p11, %p1929_p7 }
  0x89   : > { %p1949_p8 = scmp.lt.s32.totalorder %s1947_s4, %s1940_s18 }
  0x8a   : > { %p1944_p13 = pneg %p1943_p1 }
  0x8b   : > { %p1950_p5 = por %p1949_p8, %p1948_p6 }
  0x8d   : > { %p1951_p4 = pnand %p1950_p5, %p1944_p13 }
  0x8f   : > { %1954 = shalt.err (!%p1951_p4)
}
  0x90   : > { %1664 = dma.hbm_to_vmem [thread:$0]  (!%p2458_p2), %s464_s27, 128, %s467_s3, %s454_s7  }
  0x91   : > { %475 = sbr.rel (%p2294_p3) target bundleno = 1650 (0x672), region = 60  ;;  %s2469_s5 = sand.u32 (!%p2294_p3), 1, %s2119_s25  }
  0x92   : > { %s1492_s19 = sshll.u32 (!%p2294_p3), %s2469_s5, 3  ;;  %s478_s21 = scalar_lea.sflag (!%p2294_p3), [#allocation8], %s2469_s5 }
  0x93   : > { %s2473_s8 = scalar_lea.vmem (!%p2294_p3), [#allocation7], %s1492_s19 }
  0x96   : > { %2078 = dma.done.wait (%p2369_p10), %s478_s21, 128  }
  0x97   : > { %2080 = vsyncadd (%p2369_p10), %s478_s21, 4294967168  ;;  %p2774_p5 = scmp.eq.s32.totalorder %s2289_s14, 0 }
  0x99   : > { %2082 = dma.done.wait (%p2774_p5), [#allocation11], 1024   ;;  %p2775_p3 = pmov %p2774_p5 }
  0x9b   : > { %2084 = vsyncadd (%p2775_p3), [#allocation11], 4294966272  ;;  %p2776_p12 = pmov %p2775_p3 }
  0x9c   : > { %p2777_p4 = pmov %p2775_p3 }
  0x9d   : > { %2086 = dma.done.wait (%p2776_p12), [#allocation14], 1024  }
  0x9e   : > { %2088 = vsyncadd (%p2777_p4), [#allocation14], 4294966272  ;;  %s502_s27 = sand.u32 1, %s2107_s22  }
  0x9f   : > { %s2488_s15 = sshll.u32 %s502_s27, 3  ;;  %s503_s6 = scalar_lea.sflag [#allocation17], %s502_s27 }
  0xa0   : > { %s506_s2 = scalar_lea.vmem [#allocation16], %s2488_s15 }
  0xa1   : > { %2090 = dma.done.wait (%p2416_p0), %s503_s6, 128  }
  0xa2   : > { %2092 = vsyncadd (%p2416_p0), %s503_s6, 4294967168  ;;  %s2495_s3 = scalar_lea.vmem [#allocation18], %s1492_s19  ;;  %s554_s20 = scalar_lea.vmem [#allocation19], %s2488_s15 }
  0xa3   : > { %s2726_s12 = scalar_lea.vmem [#allocation21], %s2488_s15  ;;  %s2778_s10 = sld [smem:[#allocation29_spill]] }
  0xa9   : > { %p1501_p10 = scmp.ne.s32.totalorder %s2778_s10, 0 }
  0xaa   : > { %s2779_s28 = sld [smem:[#allocation42_spill]] (!%p1501_p10)  ;;  %s2155_s24 = smov (!%p1501_p10), 120  }
  0xab   : > { %565 = sbr.rel (%p1501_p10) target bundleno = 528 (0x210), region = 88  ;;  %s2780_s16 = sld [smem:[#allocation43_spill]] (!%p1501_p10) }
  0xac   : > { %s2156_s4 = smov (!%p1501_p10), 112   ;;  %s2157_s27 = smov (!%p1501_p10), 104  }
  0xb0   : > { %v570_v0 = vld [vmem:[#allocation10 + $0x18] sm:$0xff]  ;;  %vm578_vm0 = vcmask 261120   ;;  %v2153_v2 = vmov 0.0   ;;  %v569_v3 = vld [vmem:[#allocation10 + $0x10] sm:$0xff]  ;;  %vm2154_vm1 = vmmov 0   ;;  %v568_v5 = vld [vmem:[#allocation10 + $0x8] sm:$0xff] }
  0xb1   : > { %v668_v1 = vld [vmem:[#allocation12 + $0x18] sm:$0xff]  ;;  %1565 = vmatprep.subr.mxu0 %v2153_v2  ;;  %1576 = vmatprep.subr.mxu1 %v2153_v2  ;;  %v667_v4 = vld [vmem:[#allocation12 + $0x10] sm:$0xff]  ;;  %v666_v6 = vld [vmem:[#allocation12 + $0x8] sm:$0xff]  ;;  %vm851_vm2 = vcmask 64512  }
  0xb2   : > { %1566 = vmatpush3.xpose.msk.msra.mxu0 %vm578_vm0, %v570_v0  ;;  %1577 = vmatpush3.xpose.msk.msra.mxu1 %vm578_vm0, %v668_v1  ;;  %v567_v7 = vld [vmem:[#allocation10] sm:$0xff]  ;;  %v566_v9 = vld [vmem:[%s2473_s8] sm:$0xff]  ;;  %v759_v12 = vld [vmem:[#allocation13 + $0x8] sm:$0xff]  ;;  %s2781_s8 = sld [smem:[#allocation44_spill]] }
  0xb3   : > { %1567 = vmatprep.subr.mxu0 %v2153_v2  ;;  %1578 = vmatprep.subr.mxu1 %v2153_v2  ;;  %v665_v8 = vld [vmem:[#allocation12] sm:$0xff]  ;;  %v761_v10 = vld [vmem:[#allocation13 + $0x18] sm:$0xff]  ;;  %v760_v11 = vld [vmem:[#allocation13 + $0x10] sm:$0xff] }
  0xb4   : > { %1573 = vmatprep.mubr.msk.f32.mxu0 %vm2154_vm1, %v2153_v2  ;;  %1584 = vmatprep.mubr.msk.f32.mxu1 %vm2154_vm1, %v2153_v2  ;;  %v758_v13 = vld [vmem:[#allocation13] sm:$0xff]  ;;  %v1502_v14 = vld [vmem:[%s2779_s28] ss:$0 sm:$0xff] }
  0xb5   : > { %v1508_v15 = vld [vmem:[%s2780_s16] ss:$0 sm:$0xff] }
  0xb6   : > { %1568 = vmatpush3.xpose.msk.msra.mxu0 %vm578_vm0, %v569_v3  ;;  %1579 = vmatpush3.xpose.msk.msra.mxu1 %vm578_vm0, %v667_v4 }
  0xb7   : > { %1569 = vmatprep.subr.mxu0 %v2153_v2  ;;  %1580 = vmatprep.subr.mxu1 %v2153_v2 }
  0xb8   : > { %v1514_v23 = vld [vmem:[%s2781_s8] ss:$0 sm:$0xff] }
  0xba   : > { %1570 = vmatpush3.xpose.msk.msra.mxu0 %vm578_vm0, %v568_v5  ;;  %1581 = vmatpush3.xpose.msk.msra.mxu1 %vm578_vm0, %v666_v6 }
  0xbb   : > { %1571 = vmatprep.subr.mxu0 %v2153_v2  ;;  %1582 = vmatprep.subr.mxu1 %v2153_v2 }
  0xbe   : > { %1572 = vmatpush3.xpose.msk.msra.mxu0 %vm578_vm0, %v567_v7  ;;  %1583 = vmatpush3.xpose.msk.msra.mxu1 %vm578_vm0, %v665_v8 }
  0xbf   : > { %1587 = vmatprep.subr.mxu0 %v2153_v2 }
  0xc1   : > { %1574 = vmatmul.mubr.msk.f32.vlgmr.msra.gmra.mxu0 %vm578_vm0, %v566_v9  ;;  %1585 = vmatmul.mubr.msk.f32.vlgmr.msra.gmra.mxu1 %vm578_vm0, %v566_v9 }
  0xc2   : > { %1588 = vmatpush3.xpose.msk.msra.mxu0 %vm578_vm0, %v761_v10  ;;  %1595 = vmatprep.mubr.msk.f32.mxu0 %vm2154_vm1, %v2153_v2 }
  0xc3   : > { %1589 = vmatprep.subr.mxu0 %v2153_v2 }
  0xc6   : > { %1590 = vmatpush3.xpose.msk.msra.mxu0 %vm578_vm0, %v760_v11 }
  0xc7   : > { %1591 = vmatprep.subr.mxu0 %v2153_v2 }
  0xca   : > { %1592 = vmatpush3.xpose.msk.msra.mxu0 %vm578_vm0, %v759_v12 }
  0xcb   : > { %1593 = vmatprep.subr.mxu0 %v2153_v2 }
  0xce   : > { %1594 = vmatpush3.xpose.msk.msra.mxu0 %vm578_vm0, %v758_v13 }
  0xd1   : > { %1596 = vmatmul.mubr.msk.f32.vlgmr.msra.gmra.mxu0 %vm578_vm0, %v566_v9 }
 0x181   : > { %v660_v16 = vpop.f32.mrf.mxu0  ;;  %v754_v17 = vpop.f32.mrf.mxu1 }
 0x182   : > { %v661_v18 = vadd.f32 %v1502_v14, %v660_v16  ;;  %v755_v19 = vadd.f32 %v1508_v15, %v754_v17 }
 0x183   : > { %v1575_v20 = vpop.f32.mrf.mxu0  ;;  %v1586_v21 = vpop.f32.mrf.mxu1 }
 0x184   : > { %v664_v22 = vmul.f32 0.35355338, %v661_v18  ;;  %853 = vst.msk [vmem:[#allocation3] sm:$0xff] %vm851_vm2, %v755_v19  ;;  %862 = vrot.lane.b32.xlu0 %v755_v19, %s2155_s24 }
 0x186   : > { %852 = vst.msk [vmem:[#allocation2] sm:$0xff] %vm851_vm2, %v664_v22  ;;  %873 = vrot.lane.b32.xlu1 %v664_v22, %s2156_s4 }
 0x188   : > { %878 = vrot.lane.b32.xlu0 %v755_v19, %s2156_s4 }
 0x18c   : > { %856 = vrot.lane.b32.xlu0 %v664_v22, %s2155_s24 }
 0x190   : > { %888 = vrot.lane.b32.xlu0 %v664_v22, %s2157_s27 }
 0x191   : > { %v847_v24 = vpop.f32.mrf.mxu0 }
 0x192   : > { %v848_v25 = vadd.f32 %v1514_v23, %v847_v24 }
 0x193   : > { %v1597_v26 = vpop.f32.mrf.mxu0 }
 0x194   : > { %854 = vst.msk [vmem:[#allocation4] sm:$0xff] %vm851_vm2, %v848_v25  ;;  %898 = vrot.lane.b32.xlu0 %v848_v25, %s2157_s27  ;;  %868 = vrot.lane.b32.xlu1 %v848_v25, %s2155_s24 }
 0x198   : > { %883 = vrot.lane.b32.xlu1 %v848_v25, %s2156_s4 }
 0x19c   : > { %893 = vrot.lane.b32.xlu1 %v755_v19, %s2157_s27 }
 0x1f6   : > { %v863_v27 = vpop.permute.xlu0 %862 }
 0x1f7   : > { %866 = vst.msk [vmem:[#allocation3 + $0x8] sm:$0xff] %vm851_vm2, %v863_v27 }
 0x1f8   : > { %v874_v28 = vpop.permute.xlu1 %873 }
 0x1f9   : > { %877 = vst.msk [vmem:[#allocation2 + $0x10] sm:$0xff] %vm851_vm2, %v874_v28 }
 0x1fa   : > { %v879_v29 = vpop.permute.xlu0 %878 }
 0x1fb   : > { %882 = vst.msk [vmem:[#allocation3 + $0x10] sm:$0xff] %vm851_vm2, %v879_v29 }
 0x1fe   : > { %v857_v30 = vpop.permute.xlu0 %856 }
 0x1ff   : > { %860 = vst.msk [vmem:[#allocation2 + $0x8] sm:$0xff] %vm851_vm2, %v857_v30 }
 0x202   : > { %v889_v31 = vpop.permute.xlu0 %888 }
 0x203   : > { %892 = vst.msk [vmem:[#allocation2 + $0x18] sm:$0xff] %vm851_vm2, %v889_v31 }
 0x206   : > { %v899_v32 = vpop.permute.xlu0 %898  ;;  %v869_v33 = vpop.permute.xlu1 %868 }
 0x207   : > { %902 = vst.msk [vmem:[#allocation4 + $0x18] sm:$0xff] %vm851_vm2, %v899_v32  ;;  %872 = vst.msk [vmem:[#allocation4 + $0x8] sm:$0xff] %vm851_vm2, %v869_v33 }
 0x20a   : > { %v884_v34 = vpop.permute.xlu1 %883 }
 0x20b   : > { %887 = vst.msk [vmem:[#allocation4 + $0x10] sm:$0xff] %vm851_vm2, %v884_v34 }
 0x20e   : > { %v894_v35 = vpop.permute.xlu1 %893 }
 0x20f   : > { %897 = vst.msk [vmem:[#allocation3 + $0x18] sm:$0xff] %vm851_vm2, %v894_v35 }
 0x210 PF: > { %s2782_s6 = sld [smem:[#allocation29_spill]]  ;;  %vm910_vm3 = vcmask 64512   ;;  %v2158_v36 = vmov 0.0   ;;  %vm2159_vm4 = vmmov 0   ;;  %v987_v39 = vld [vmem:[%s506_s2] sm:$0xff] }
 0x211   : > { %1598 = vmatprep.subr.mxu0 %v2158_v36  ;;  %1600 = vmatprep.mubr.msk.f32.mxu0 %vm2159_vm4, %v2158_v36 }
 0x212   : > { %1603 = vmatprep.subr.mxu1 %v2158_v36  ;;  %1605 = vmatprep.mubr.msk.f32.mxu1 %vm2159_vm4, %v2158_v36 }
 0x216   : > { %s2541_s10 = sshll.u32 %s2782_s6, 3  ;;  %p1524_p0 = scmp.ne.s32.totalorder %s2782_s6, 3 }
 0x217   : > { %s906_s1 = scalar_lea.vmem [#allocation3], %s2541_s10  ;;  %s904_s11 = scalar_lea.vmem [#allocation2], %s2541_s10 }
 0x218   : > { %v907_v37 = vld [vmem:[%s906_s1] sm:$0xff]  ;;  %s908_s2 = scalar_lea.vmem [#allocation4], %s2541_s10  ;;  %s1076_s28 = scalar_lea.vmem [#allocation5], %s2541_s10 }
 0x219   : > { %1599 = vmatpush3.xpose.msk.msra.mxu0 %vm910_vm3, %v907_v37  ;;  %v905_v38 = vld [vmem:[%s904_s11] sm:$0xff]  ;;  %s2160_s7 = smov (!%p1524_p0), 8   ;;  %s2162_s18 = smov (!%p1524_p0), 24  }
 0x21a   : > { %v909_v50 = vld [vmem:[%s908_s2] sm:$0xff]  ;;  %s2164_s16 = smov (!%p1524_p0), 16   ;;  %s2783_s19 = sld [smem:[#allocation46_spill]] (!%p1524_p0) }
 0x21b   : > { %1604 = vmatpush3.msra.mxu1 %v909_v50 }
 0x21c   : > { %1601 = vmatmul.mubr.msk.f32.vlgmr.msra.gmra.mxu0 %vm910_vm3, %v905_v38 }
 0x2dc   : > { %v983_v40 = vpop.f32.mrf.mxu0 }
 0x2dd   : > { %v988_v41 = vadd.f32 %v987_v39, %v983_v40  ;;  %1001 = vst.msk [vmem:[%s2726_s12] sm:$0xff] %vm910_vm3, %v983_v40 }
 0x2de   : > { %v1602_v42 = vpop.f32.mrf.mxu0 }
 0x2df   : > { %v989_v43 = vmul.f32 1.25, %v988_v41 }
 0x2e1   : > { %v990_v44 = vsel %vm910_vm3, %v989_v43, -inf }
 0x2e2   : > { %991 = vmax.xlane.f32.xlu0 %v990_v44 }
 0x36b   : > { %v992_v45 = vpop.xlane.xlu0 %991 }
 0x36c   : > { %v993_v46 = vsub.f32 %v989_v43, %v992_v45 }
 0x36e   : > { %v994_v47 = vmul.f32 1.442695, %v993_v46 }
 0x370   : > { %1791 = vpow2.f32 %v994_v47 }
 0x37d   : > { %v1792_v48 = vpop.eup %1791 }
 0x37e   : > { %v996_v49 = vsel %vm910_vm3, %v1792_v48, 0.0 }
 0x37f   : > { %997 = vadd.xlane.f32.xlu0 %v996_v49 }
 0x408   : > { %v998_v51 = vpop.xlane.xlu0 %997 }
 0x409   : > { %1793 = vrcp.f32 %v998_v51 }
 0x416   : > { %v1794_v52 = vpop.eup %1793 }
 0x417   : > { %v1000_v53 = vmul.f32 %v1794_v52, %v1792_v48 }
 0x419   : > { %1002 = vst.msk [vmem:[%s554_s20] sm:$0xff] %vm910_vm3, %v1000_v53  ;;  %1606 = vmatmul.mubr.msk.f32.vlgmr.msra.gmra.mxu1 %vm910_vm3, %v1000_v53 }
 0x4d7   : > { %1081 = sbr.rel (%p1524_p0) target bundleno = 1574 (0x626), region = 92 }
 0x4d9   : > { %v1072_v54 = vpop.f32.mrf.mxu1 }
 0x4da   : > { %1077 = vst.msk [vmem:[%s1076_s28] sm:$0xff] %vm910_vm3, %v1072_v54 }
 0x4db   : > { %v1607_v55 = vpop.f32.mrf.mxu1 }
 0x4dc   : > { %v2161_v58 = vmov 0.0   ;;  %v1112_v59 = vld [vmem:[#allocation15 + $0x18] sm:$0xff]  ;;  %vm1120_vm5 = vcmask 261120   ;;  %v1111_v62 = vld [vmem:[#allocation15 + $0x10] sm:$0xff]  ;;  %vm2163_vm6 = vmmov 0   ;;  %v1110_v63 = vld [vmem:[#allocation15 + $0x8] sm:$0xff] }
 0x4dd   : > { %1608 = vmatprep.subr.mxu0 %v2161_v58  ;;  %1616 = vmatprep.mubr.msk.f32.mxu0 %vm2163_vm6, %v2161_v58  ;;  %v1109_v0 = vld [vmem:[#allocation15] sm:$0xff]  ;;  %vm1090_vm7 = vcmask 130112   ;;  %vm1098_vm8 = vcmask 195712   ;;  %vm1106_vm9 = vcmask 261312   ;;  %v1525_v5 = vld [vmem:[%s2783_s19] ss:$0 sm:$0xff] }
 0x4de   : > { %1609 = vmatpush3.xpose.msk.msra.mxu0 %vm1120_vm5, %v1112_v59 }
 0x4df   : > { %1610 = vmatprep.subr.mxu0 %v2161_v58 }
 0x4e1   : > { %v1085_v56 = vld [vmem:[#allocation5 + $0x8] sm:$0xff]  ;;  %v1101_v57 = vld [vmem:[#allocation5 + $0x18] sm:$0xff]  ;;  %v1082_v60 = vld [vmem:[#allocation5] sm:$0xff] }
 0x4e2   : > { %1087 = vrot.lane.b32.xlu0 %v1085_v56, %s2160_s7  ;;  %v1093_v61 = vld [vmem:[#allocation5 + $0x10] sm:$0xff]  ;;  %1103 = vrot.lane.b32.xlu1 %v1101_v57, %s2162_s18  ;;  %1083 = vst.msk [vmem:[#allocation6] sm:$0xff] %vm910_vm3, %v1082_v60 }
 0x4e3   : > { %1611 = vmatpush3.xpose.msk.msra.mxu0 %vm1120_vm5, %v1111_v62 }
 0x4e4   : > { %1612 = vmatprep.subr.mxu0 %v2161_v58 }
 0x4e6   : > { %1095 = vrot.lane.b32.xlu0 %v1093_v61, %s2164_s16 }
 0x4e7   : > { %1613 = vmatpush3.xpose.msk.msra.mxu0 %vm1120_vm5, %v1110_v63 }
 0x4e8   : > { %1614 = vmatprep.subr.mxu0 %v2161_v58 }
 0x4eb   : > { %1615 = vmatpush3.xpose.msk.msra.mxu0 %vm1120_vm5, %v1109_v0 }
 0x554   : > { %v1088_v1 = vpop.permute.xlu0 %1087  ;;  %v1104_v2 = vpop.permute.xlu1 %1103 }
 0x555   : > { %1091 = vst.msk [vmem:[#allocation6] sm:$0xff] %vm1090_vm7, %v1088_v1 }
 0x558   : > { %v1096_v3 = vpop.permute.xlu0 %1095 }
 0x559   : > { %1099 = vst.msk [vmem:[#allocation6] sm:$0xff] %vm1098_vm8, %v1096_v3 }
 0x55a   : > { %1107 = vst.msk [vmem:[#allocation6] sm:$0xff] %vm1106_vm9, %v1104_v2 }
 0x561   : > { %v1108_v4 = vld [vmem:[#allocation6] sm:$0xff] }
 0x562   : > { %1617 = vmatmul.mubr.msk.f32.vlgmr.msra.gmra.mxu0 %vm1120_vm5, %v1108_v4 }
 0x622   : > { %v1202_v6 = vpop.f32.mrf.mxu0 }
 0x623   : > { %v1203_v7 = vadd.f32 %v1525_v5, %v1202_v6 }
 0x624   : > { %v1618_v8 = vpop.f32.mrf.mxu0 }
 0x625   : > { %1206 = vst.msk [vmem:[%s2495_s3] sm:$0xff] %vm1120_vm5, %v1203_v7 }
 0x626 PF: > { %s2784_s21 = sld [smem:[#allocation30_spill]]  ;;  %s1212_s6 = sand.u32 1, %s2289_s14  }
 0x627   : > { %s2785_s8 = sld [smem:[#allocation29_spill]]  ;;  %s1246_s2 = sshll.u32 %s554_s20, 4  ;;  %s1247_s2 = int_to_ptr.vmem [resolvable:$true] %s1246_s2 }
 0x628   : > { %s2786_s27 = sld [smem:[#allocation35_spill]]  ;;  %s2586_s24 = scalar_lea.sflag [#allocation20], %s1212_s6 }
 0x629   : > { %s2787_s18 = sld [smem:[#allocation49_spill]]  ;;  %s1955_s4 = scalar_lea.vmem %s1247_s2, 128 }
 0x62a   : > { %p1956_p8 = scmp.ne.s32.totalorder %s1247_s2, %s1955_s4  ;;  %s2165_s14 = smov [#allocation19]  }
 0x62b   : > { %s1959_s19 = sshll.u32 %s2165_s14, 4  ;;  %s1960_s19 = int_to_ptr.vmem [resolvable:$false] %s1959_s19 }
 0x62c   : > { %s1535_s10 = sshll.u32 %s2784_s21, 2  ;;  %p1962_p11 = scmp.lt.s32.totalorder %s1247_s2, %s1960_s19 }
 0x62d   : > { %s2576_s1 = sadd.s32 %s2785_s8, %s1535_s10  ;;  %s1961_s8 = scalar_lea.vmem %s1960_s19, 256 }
 0x62e   : > { %s1536_s11 = sshll.u32 %s2576_s1, 7  ;;  %p2788_p9 = scmp.ne.s32.totalorder %s2786_s27, 0 }
 0x62f   : > { %s1244_s16 = scalar_lea.hbm %s2787_s18, %s1536_s11  ;;  %p1963_p1 = scmp.lt.s32.totalorder %s1961_s8, %s1955_s4 }
 0x630   : > { %p1957_p2 = pnand %p1956_p8, %p2788_p9 }
 0x631   : > { %p1964_p13 = por %p1963_p1, %p1962_p11 }
 0x632   : > { %p1958_p7 = pneg %p1957_p2 }
 0x634   : > { %p1965_p6 = pnand %p1964_p13, %p1958_p7 }
 0x636   : > { %1968 = shalt.err (!%p1965_p6)
}
 0x637   : > { %s1969_s20 = scalar_lea.hbm %s1244_s16, 128  ;;  %s1973_s28 = scalar_lea.hbm %s2787_s18, 1024 }
 0x638   : > { %p1970_p5 = scmp.ne.s32.totalorder %s1244_s16, %s1969_s20  ;;  %p1974_p4 = scmp.lt.s32.totalorder %s1244_s16, %s2787_s18 }
 0x639   : > { %p1975_p10 = scmp.lt.s32.totalorder %s1973_s28, %s1969_s20 }
 0x63a   : > { %p1971_p3 = pnand %p1970_p5, %p2788_p9 }
 0x63b   : > { %p1976_p0 = por %p1975_p10, %p1974_p4 }
 0x63c   : > { %p1972_p12 = pneg %p1971_p3 }
 0x63e   : > { %p1977_p8 = pnand %p1976_p0, %p1972_p12 }
 0x640   : > { %1980 = shalt.err (!%p1977_p8)
}
 0x641   : > { %s2789_s4 = sld [smem:[#allocation32_spill]]  ;;  %s1534_s14 = sshll.u32 %s2784_s21, 7 }
 0x642   : > { %1640 = dma.vmem_to_hbm [thread:$0]  (%p2788_p9), %s1247_s2, 128, %s1244_s16, %s2586_s24  }
 0x643   : > { %s2790_s6 = sld [smem:[#allocation48_spill]]  ;;  %s1231_s12 = sshll.u32 %s2495_s3, 4  ;;  %s1232_s12 = int_to_ptr.vmem [resolvable:$true] %s1231_s12 }
 0x644   : > { %s2791_s7 = sld [smem:[#allocation50_spill]]  ;;  %s1208_s18 = scalar_lea.sflag [#allocation9], %s2469_s5 }
 0x645   : > { %s1981_s30 = scalar_lea.vmem %s1232_s12, 128  ;;  %s2166_s21 = smov [#allocation18]  }
 0x646   : > { %p1982_p2 = scmp.ne.s32.totalorder %s1232_s12, %s1981_s30  ;;  %s1985_s2 = sshll.u32 %s2166_s21, 4  ;;  %s1986_s2 = int_to_ptr.vmem [resolvable:$false] %s1985_s2 }
 0x647   : > { %p2792_p7 = scmp.ne.s32.totalorder %s2789_s4, 0  ;;  %s1987_s16 = scalar_lea.vmem %s1986_s2, 256 }
 0x648   : > { %p1988_p13 = scmp.lt.s32.totalorder %s1232_s12, %s1986_s2  ;;  %p1989_p6 = scmp.lt.s32.totalorder %s1987_s16, %s1981_s30 }
 0x649   : > { %s2605_s10 = scalar_lea.hbm %s2790_s6, %s1534_s14  ;;  %p1983_p11 = pnand %p1982_p2, %p2792_p7 }
 0x64a   : > { %s2613_s9 = scalar_lea.hbm %s2791_s7, %s1536_s11  ;;  %p1990_p5 = por %p1989_p6, %p1988_p13 }
 0x64b   : > { %p1984_p1 = pneg %p1983_p11 }
 0x64d   : > { %p1991_p3 = pnand %p1990_p5, %p1984_p1 }
 0x64f   : > { %1994 = shalt.err (!%p1991_p3)
}
 0x650   : > { %s1995_s3 = scalar_lea.hbm %s2605_s10, 128  ;;  %s1999_s11 = scalar_lea.hbm %s2790_s6, 256 }
 0x651   : > { %p1996_p12 = scmp.ne.s32.totalorder %s2605_s10, %s1995_s3  ;;  %p2000_p0 = scmp.lt.s32.totalorder %s2605_s10, %s2790_s6 }
 0x652   : > { %p2001_p8 = scmp.lt.s32.totalorder %s1999_s11, %s1995_s3 }
 0x653   : > { %p1997_p4 = pnand %p1996_p12, %p2792_p7 }
 0x654   : > { %p2002_p2 = por %p2001_p8, %p2000_p0 }
 0x655   : > { %p1998_p10 = pneg %p1997_p4 }
 0x657   : > { %p2003_p11 = pnand %p2002_p2, %p1998_p10 }
 0x659   : > { %2006 = shalt.err (!%p2003_p11)
}
 0x65a   : > { %1639 = dma.vmem_to_hbm [thread:$0]  (%p2792_p7), %s1232_s12, 128, %s2605_s10, %s1208_s18  }
 0x65b   : > { %s2793_s30 = scalar_lea.vmem [#allocation21], %s2488_s15  ;;  %s2167_s28 = smov [#allocation21]  }
 0x65c   : > { %s1261_s8 = sshll.u32 %s2793_s30, 4  ;;  %s2011_s21 = sshll.u32 %s2167_s28, 4  ;;  %s1262_s8 = int_to_ptr.vmem [resolvable:$true] %s1261_s8  ;;  %s2012_s21 = int_to_ptr.vmem [resolvable:$false] %s2011_s21 }
 0x65d   : > { %s2007_s20 = scalar_lea.vmem %s1262_s8, 128  ;;  %s2013_s2 = scalar_lea.vmem %s2012_s21, 256 }
 0x65e   : > { %p2008_p1 = scmp.ne.s32.totalorder %s1262_s8, %s2007_s20  ;;  %p2014_p5 = scmp.lt.s32.totalorder %s1262_s8, %s2012_s21 }
 0x65f   : > { %p2015_p3 = scmp.lt.s32.totalorder %s2013_s2, %s2007_s20 }
 0x660   : > { %p2009_p13 = pnand %p2008_p1, %p2788_p9 }
 0x661   : > { %p2016_p12 = por %p2015_p3, %p2014_p5 }
 0x662   : > { %p2010_p6 = pneg %p2009_p13 }
 0x664   : > { %p2017_p4 = pnand %p2016_p12, %p2010_p6 }
 0x666   : > { %2020 = shalt.err (!%p2017_p4)
}
 0x667   : > { %s2021_s15 = scalar_lea.hbm %s2613_s9, 128  ;;  %s2025_s10 = scalar_lea.hbm %s2791_s7, 1024 }
 0x668   : > { %p2022_p7 = scmp.ne.s32.totalorder %s2613_s9, %s2021_s15  ;;  %p2026_p8 = scmp.lt.s32.totalorder %s2613_s9, %s2791_s7 }
 0x669   : > { %p2027_p2 = scmp.lt.s32.totalorder %s2025_s10, %s2021_s15 }
 0x66a   : > { %p2023_p10 = pnand %p2022_p7, %p2788_p9 }
 0x66b   : > { %p2028_p11 = por %p2027_p2, %p2026_p8 }
 0x66c   : > { %p2024_p0 = pneg %p2023_p10 }
 0x66e   : > { %p2029_p1 = pnand %p2028_p11, %p2024_p0 }
 0x670   : > { %2032 = shalt.err (!%p2029_p1)
}
 0x671   : > { %1641 = dma.vmem_to_hbm [thread:$0]  (%p2788_p9), %s1262_s8, 128, %s2613_s9, %s2586_s24  }
 0x672 PF: > { %s2794_s3 = sld [smem:[#allocation28_spill]]  ;;  %p1684_p13 = scmp.ge.s32.totalorder %s2143_s13, 2 }
 0x673   : > { %s2795_s5 = sld [smem:[#allocation33_spill]] }
 0x678   : > { %s1273_s1 = sand.u32 1, %s2794_s3  }
 0x679   : > { %p2796_p6 = scmp.ne.s32.totalorder %s2795_s5, 0  ;;  %s1274_s11 = scalar_lea.sflag [#allocation9], %s1273_s1 }
 0x67b   : > { %p1666_p5 = pnand %p1684_p13, %p2796_p6 }
 0x67d   : > { %p1667_p3 = pneg %p1666_p5 }
 0x67f   : > { %2094 = dma.done.wait (%p1667_p3), %s1274_s11, 128  }
 0x680   : > { %2096 = vsyncadd (%p1667_p3), %s1274_s11, 4294967168  ;;  %s2797_s14 = sadd.s32 4294967294, %s2143_s13   ;;  %s2798_s19 = sld [smem:[#allocation36_spill]] }
 0x681   : > { %s1282_s30 = sand.u32 1, %s2797_s14  }
 0x682   : > { %s1283_s9 = scalar_lea.sflag [#allocation20], %s1282_s30 }
 0x686   : > { %p2799_p12 = scmp.ne.s32.totalorder %s2798_s19, 0 }
 0x688   : > { %p1669_p4 = pnand %p1684_p13, %p2799_p12 }
 0x68a   : > { %p1670_p7 = pneg %p1669_p4 }
 0x68c   : > { %2098 = dma.done.wait (%p1670_p7), %s1283_s9, 256  }
 0x68d   : > { %2100 = vsyncadd (%p1670_p7), %s1283_s9, 4294967040  ;;  %s37_s13 = sadd.s32 1, %s2143_s13   ;;  %s2800_s28 = sld [smem:[#allocation31_spill]] }
 0x68e   : > { %p34_p9 = scmp.ge.s32.totalorder %s37_s13, 10   ;;  %s2801_s8 = sld [smem:[#allocation34_spill]] }
 0x68f   : > { %s2802_s30 = sld [smem:[#allocation37_spill]]  ;;  %s2803_s21 = smov %s2107_s22 }
 0x690   : > { %s2804_s22 = smov %s2111_s23  ;;  %s2805_s23 = smov %s2448_s0 }
 0x691   : > { %s2806_s24 = smov %s2119_s25  ;;  %s2807_s25 = smov %s2123_s26 }
 0x692   : > { %s2808_s26 = smov %s2445_s17  ;;  %s2809_s27 = smov %s2135_s29 }
 0x693   :  { %36 = sbr.rel (!%p34_p9) target bundleno = 29 (0x1d), region = 190 }
 0x694   : > { %s2810_s29 = smov %s2801_s8 }
 0x698   :  { %1297 = vsyncpa [#allocation8], 1 }
 0x699   :  { %1299 = vsyncpa [#allocation8 + $0x1], 1 }
 0x69a   :  { %1300 = vsyncpa [#allocation11], 1 }
 0x69b   :  { %1301 = vsyncpa [#allocation14], 1 }
 0x69c   :  { %1302 = vsyncpa [#allocation17], 1 }
 0x69d   :  { %1304 = vsyncpa [#allocation17 + $0x1], 1 }
 0x69e   :  { %1305 = vsyncpa [#allocation9], 1 }
 0x69f   :  { %1307 = vsyncpa [#allocation9 + $0x1], 1 }
 0x6a0   :  { %1308 = vsyncpa [#allocation20], 1 }
 0x6a1   :  { %1310 = vsyncpa [#allocation20 + $0x1], 1 }

</bundles_post_ra>
